<compile_context>
chip_gen: v7x
topology: tpu7x:2x2x1
jax: 0.10.0
libtpu: 0.0.40
codegen_flags: <defaults>
</compile_context>

<pallas_src>
import functools

import jax
import jax.numpy as jnp
from jax.experimental import pallas as pl
from jax.experimental.pallas import tpu as pltpu


_BLOCK_BYTES = 4 * 1024 * 1024        # ~4 MiB per pipelined block
_FUSE_LIMIT_BYTES = 4 * 1024 * 1024   # fuse the two passes below this size
_VMEM_LIMIT_BYTES = 32 * 1024 * 1024  # safe scoped-VMEM budget on v5e/v6e/v7x


def _round_up(a, b):
    return -(-a // b) * b


def _collapse_2d(shape):
    """Free (contiguous trailing-dim) 2-D collapse (R, C), preferring C >= 128."""
    if len(shape) == 0:
        return 1, 1
    suffix = 1
    split = len(shape)
    for k in range(len(shape) - 1, -1, -1):
        suffix *= shape[k]
        split = k
        if suffix >= 128:
            break
    rows = 1
    for d in shape[:split]:
        rows *= d
    return rows, suffix


# ---------------- Fused path: reduction + binarize in one pass -----------------
def _fused_kernel(inv_thr_ref, x_ref, o_ref, hthr_ref, *, x_thr_scale):
    xs = x_ref[...].astype(jnp.float32) * inv_thr_ref[0]
    c = jnp.clip(xs, 0.0, 1.0)
    hoyer = jnp.sum(c * c) / jnp.sum(c)            # c in [0,1] => |c| == c
    hthr_ref[0] = hoyer
    o_ref[...] = (xs >= jnp.float32(x_thr_scale) * hoyer).astype(o_ref.dtype)


# ---------------- Pass 1: global reduction (sum(c^2), sum(c)) -------------------
def _hoyer_stats_kernel(inv_thr_ref, x_ref, sums_ref, acc_sq_ref, acc_sum_ref,
                        *, rows, cols, mask_rows, mask_cols):
    i = pl.program_id(0)
    j = pl.program_id(1)

    @pl.when((i == 0) & (j == 0))
    def _():
        acc_sq_ref[...] = jnp.zeros_like(acc_sq_ref)
        acc_sum_ref[...] = jnp.zeros_like(acc_sum_ref)

    xs = x_ref[...].astype(jnp.float32) * inv_thr_ref[0]
    c = jnp.clip(xs, 0.0, 1.0)

    # Static (trace-time) decision: only emit masking when a dim doesn't divide.
    if mask_rows or mask_cols:
        tm, tl = x_ref.shape
        valid = None
        if mask_rows:
            r = i * tm + jax.lax.broadcasted_iota(jnp.int32, (tm, tl), 0)
            valid = r < rows
        if mask_cols:
            cc = j * tl + jax.lax.broadcasted_iota(jnp.int32, (tm, tl), 1)
            vc = cc < cols
            valid = vc if valid is None else (valid & vc)
        c = jnp.where(valid, c, 0.0)   # also kills any garbage/NaN in OOB lanes

    # Vector partials only; final cross-lane reduce happens once at the end.
    acc_sq_ref[...] += jnp.sum(c * c, axis=0, keepdims=True)
    acc_sum_ref[...] += jnp.sum(c, axis=0, keepdims=True)   # |c| == c

    @pl.when((i == pl.num_programs(0) - 1) & (j == pl.num_programs(1) - 1))
    def _():
        sums_ref[0] = jnp.sum(acc_sq_ref[...])
        sums_ref[1] = jnp.sum(acc_sum_ref[...])


# ---------------- Pass 2: pure compare against folded scalar threshold ----------
def _spike_kernel(thr_eff_ref, x_ref, o_ref):
    # OOB rows/lanes of edge blocks are garbage on read, but their writes are
    # discarded by Pallas, so no masking is needed here.
    o_ref[...] = (x_ref[...] >= thr_eff_ref[0]).astype(o_ref.dtype)


def hoyer_biact_1d(x, threshold, running_hoyer_thr, *, momentum=0.1,
                   x_thr_scale=1.0, training=True,
                   block_bytes=_BLOCK_BYTES, fuse_limit_bytes=_FUSE_LIMIT_BYTES):
    """HoyerBiAct1d forward (spike_type='sum'). Returns (out, new_running_hoyer_thr)."""
    orig_shape = x.shape
    R, C = _collapse_2d(orig_shape)
    x2 = x.reshape(R, C)                 # free: contiguous trailing-dim collapse

    abs_thr = jnp.abs(jnp.asarray(threshold, jnp.float32))
    inv_thr = jnp.reshape(1.0 / abs_thr, (1,))
    running = jnp.asarray(running_hoyer_thr, jnp.float32)

    smem_spec = pl.BlockSpec(memory_space=pltpu.MemorySpace.SMEM)

    C_pad = _round_up(C, 128)
    R_pad = _round_up(R, 8)

    # ---------------- fused single pass (whole slab fits in VMEM budget) --------
    if training and R_pad * C_pad * 4 <= fuse_limit_bytes:
        out2, hthr = pl.pallas_call(
            functools.partial(_fused_kernel, x_thr_scale=x_thr_scale),
            out_shape=(jax.ShapeDtypeStruct((R, C), x.dtype),
                       jax.ShapeDtypeStruct((1,), jnp.float32)),
            grid_spec=pltpu.PrefetchScalarGridSpec(
                num_scalar_prefetch=0,
                grid=(1,),
                in_specs=[smem_spec,
                          pl.BlockSpec((R, C), lambda i: (0, 0))],
                out_specs=(pl.BlockSpec((R, C), lambda i: (0, 0)),
                           smem_spec),
                scratch_shapes=[]),
            compiler_params=pltpu.CompilerParams(
                dimension_semantics=("arbitrary",),
                vmem_limit_bytes=_VMEM_LIMIT_BYTES),
        )(inv_thr, x2)
        hoyer_thr = hthr[0]
        new_running = momentum * hoyer_thr + (1.0 - momentum) * running
        return out2.reshape(orig_shape), new_running

    # ---------------- tiling for the two-pass path --------------------------------
    row_bytes = C_pad * 4
    if row_bytes * 8 <= block_bytes:
        tl = C                                   # full last dim: no lane masking
        tm = max(8, (block_bytes // row_bytes) // 8 * 8)
        tm = min(tm, R_pad)
    else:                                        # huge last dim: chunk lanes
        tl = max(128, (block_bytes // (4 * 8 * 128)) * 128)
        tl = min(tl, C_pad)
        tm = 8
    grid_m = pl.cdiv(R, tm)
    grid_n = pl.cdiv(C, tl)
    mask_rows = (R % tm) != 0
    mask_cols = (tl != C) and ((C % tl) != 0)

    if training:
        sums = pl.pallas_call(
            functools.partial(_hoyer_stats_kernel, rows=R, cols=C,
                              mask_rows=mask_rows, mask_cols=mask_cols),
            out_shape=jax.ShapeDtypeStruct((2,), jnp.float32),
            grid_spec=pltpu.PrefetchScalarGridSpec(
                num_scalar_prefetch=0,
                grid=(grid_m, grid_n),
                in_specs=[smem_spec,
                          pl.BlockSpec((tm, tl), lambda i, j: (i, j))],
                out_specs=smem_spec,
                scratch_shapes=[pltpu.VMEM((1, tl), jnp.float32),
                                pltpu.VMEM((1, tl), jnp.float32)]),
            compiler_params=pltpu.CompilerParams(
                dimension_semantics=("arbitrary", "arbitrary"),
                vmem_limit_bytes=_VMEM_LIMIT_BYTES),
        )(inv_thr, x2)
        hoyer_thr = sums[0] / sums[1]
        new_running = momentum * hoyer_thr + (1.0 - momentum) * running
    else:
        hoyer_thr = running.reshape(-1)[0]
        new_running = running

    # Fold scale * hoyer_thr * |thr| so pass 2 is a bare compare on raw x.
    thr_eff = jnp.reshape(
        (jnp.float32(x_thr_scale) * hoyer_thr * abs_thr).astype(jnp.float32), (1,))

    out2 = pl.pallas_call(
        _spike_kernel,
        out_shape=jax.ShapeDtypeStruct((R, C), x.dtype),
        grid_spec=pltpu.PrefetchScalarGridSpec(
            num_scalar_prefetch=0,
            grid=(grid_m, grid_n),
            in_specs=[smem_spec,
                      pl.BlockSpec((tm, tl), lambda i, j: (i, j))],
            out_specs=pl.BlockSpec((tm, tl), lambda i, j: (i, j)),
            scratch_shapes=[]),
        compiler_params=pltpu.CompilerParams(
            dimension_semantics=("parallel", "parallel"),
            vmem_limit_bytes=_VMEM_LIMIT_BYTES),
    )(thr_eff, x2)

    return out2.reshape(orig_shape), new_running


# ---------------- pure-JAX reference (faithful to the PyTorch forward) ----------
def _reference(x, threshold, running, momentum=0.1, x_thr_scale=1.0, training=True):
    xs = x.astype(jnp.float32) / jnp.abs(jnp.asarray(threshold, jnp.float32))
    if training:
        c = jnp.clip(xs, 0.0, 1.0)
        hoyer = jnp.sum(c * c) / jnp.sum(jnp.abs(c))
        new_running = momentum * hoyer + (1.0 - momentum) * jnp.asarray(running, jnp.float32)
    else:
        hoyer = jnp.asarray(running, jnp.float32).reshape(-1)[0]
        new_running = jnp.asarray(running, jnp.float32)
    out = jnp.where(xs >= x_thr_scale * hoyer, 1.0, 0.0).astype(x.dtype)
    return out, new_running


def _check(out, new_running, ref_out, ref_running, name):
    assert out.shape == ref_out.shape and out.dtype == ref_out.dtype, name
    mism = float(jnp.mean((out != ref_out).astype(jnp.float32)))
    assert mism < 1e-3, f"{name}: spike output mismatch fraction {mism}"
    assert jnp.allclose(new_running, ref_running, rtol=1e-4, atol=1e-6), \
        f"{name}: running hoyer threshold mismatch"


if __name__ == "__main__":
    key = jax.random.PRNGKey(0)
    k1, k2, k3 = jax.random.split(key, 3)

    running0 = jnp.zeros((1,), jnp.float32)   # buffer (num_features==1 for 'sum')

    # ---- test 1: small shape, training, fused single-pass path ----
    x1 = jax.random.normal(k1, (2, 8, 128), dtype=jnp.float32)
    out1, run1 = hoyer_biact_1d(x1, jnp.float32(1.0), running0,
                                momentum=0.1, x_thr_scale=1.0, training=True)
    out1 = jax.block_until_ready(out1)
    run1 = jax.block_until_ready(run1)
    ref_out1, ref_run1 = _reference(x1, jnp.float32(1.0), running0)
    _check(out1, run1, ref_out1, ref_run1, "fused/training")

    # ---- test 2: training, two-pass path, multi-step grid + ragged row edge ----
    x2 = jax.random.normal(k2, (8, 32, 300), dtype=jnp.float32)
    out2, run2 = hoyer_biact_1d(x2, jnp.float32(0.5), running0, momentum=0.1,
                                x_thr_scale=1.0, training=True,
                                fuse_limit_bytes=0, block_bytes=64 * 1024)
    out2 = jax.block_until_ready(out2)
    run2 = jax.block_until_ready(run2)
    ref_out2, ref_run2 = _reference(x2, jnp.float32(0.5), running0)
    _check(out2, run2, ref_out2, ref_run2, "two-pass/training")

    # ---- test 3: eval mode (uses running buffer, no stat update) ----
    run_eval = jnp.array([0.37], jnp.float32)
    out3, run3 = hoyer_biact_1d(x1, jnp.float32(1.0), run_eval, training=False,
                                fuse_limit_bytes=0)
    out3 = jax.block_until_ready(out3)
    ref_out3, ref_run3 = _reference(x1, jnp.float32(1.0), run_eval, training=False)
    _check(out3, run3, ref_out3, ref_run3, "eval")

    # ---- test 4: training, lane-chunked path with ragged lane edge ----
    x4 = jax.random.normal(k3, (16, 3000), dtype=jnp.float32)
    out4, run4 = hoyer_biact_1d(x4, jnp.float32(2.0), running0, momentum=0.1,
                                x_thr_scale=1.0, training=True,
                                fuse_limit_bytes=0, block_bytes=32 * 1024)
    out4 = jax.block_until_ready(out4)
    run4 = jax.block_until_ready(run4)
    ref_out4, ref_run4 = _reference(x4, jnp.float32(2.0), running0)
    _check(out4, run4, ref_out4, ref_run4, "lane-chunked/training")

    print("KERNEL_OK")
</pallas_src>

<mosaic_0001>
module attributes {stable_mosaic.version = 11 : i64} {
  func.func @_fused_kernel(%arg0: i32, %arg1: memref<1xf32, #tpu.memory_space<smem>>, %arg2: memref<16x128xf32, #tpu.memory_space<vmem>>, %arg3: memref<16x128xf32, #tpu.memory_space<vmem>>, %arg4: memref<1xf32, #tpu.memory_space<smem>>) attributes {dimension_semantics = [#tpu.dimension_semantics<arbitrary>], iteration_bounds = array<i64: 1>, scalar_prefetch = 0 : i64, scratch_operands = 0 : i64, tpu.core_type = #tpu.core_type<tc>, window_params = [{transform_indices = @transform_0, window_bounds = array<i64: 1>}, {pipeline_mode = #tpu.pipeline_mode<synchronous>, transform_indices = @transform_1, window_bounds = array<i64: 16, 128>}, {pipeline_mode = #tpu.pipeline_mode<synchronous>, transform_indices = @transform_2, window_bounds = array<i64: 16, 128>}, {transform_indices = @transform_3, window_bounds = array<i64: 1>}]} {
    %c0 = arith.constant 0 : index
    %c0_0 = arith.constant 0 : index
    %0 = vector.load %arg2[%c0, %c0_0] : memref<16x128xf32, #tpu.memory_space<vmem>>, vector<16x128xf32>
    %c0_1 = arith.constant 0 : index
    %1 = memref.load %arg1[%c0_1] : memref<1xf32, #tpu.memory_space<smem>>
    %2 = vector.broadcast %1 : f32 to vector<16x128xf32>
    %3 = arith.mulf %0, %2 : vector<16x128xf32>
    %cst = arith.constant 0.000000e+00 : f32
    %cst_2 = arith.constant 1.000000e+00 : f32
    %4 = vector.broadcast %cst : f32 to vector<16x128xf32>
    %5 = arith.maximumf %4, %3 : vector<16x128xf32>
    %6 = vector.broadcast %cst_2 : f32 to vector<16x128xf32>
    %7 = arith.minimumf %6, %5 : vector<16x128xf32>
    %8 = arith.mulf %7, %7 : vector<16x128xf32>
    %9 = vector.shape_cast %8 : vector<16x128xf32> to vector<1x16x128xf32>
    %cst_3 = arith.constant dense<0.000000e+00> : vector<1xf32>
    %10 = vector.multi_reduction <add>, %9, %cst_3 [1, 2] : vector<1x16x128xf32> to vector<1xf32>
    %11 = vector.shape_cast %10 : vector<1xf32> to vector<1x1x1xf32>
    %12 = vector.extract %11[0, 0, 0] : f32 from vector<1x1x1xf32>
    %13 = vector.shape_cast %7 : vector<16x128xf32> to vector<1x16x128xf32>
    %cst_4 = arith.constant dense<0.000000e+00> : vector<1xf32>
    %14 = vector.multi_reduction <add>, %13, %cst_4 [1, 2] : vector<1x16x128xf32> to vector<1xf32>
    %15 = vector.shape_cast %14 : vector<1xf32> to vector<1x1x1xf32>
    %16 = vector.extract %15[0, 0, 0] : f32 from vector<1x1x1xf32>
    %17 = arith.divf %12, %16 : f32
    %c0_5 = arith.constant 0 : index
    %18 = memref.load %arg4[%c0_5] : memref<1xf32, #tpu.memory_space<smem>>
    memref.store %17, %arg4[%c0_5] : memref<1xf32, #tpu.memory_space<smem>>
    %cst_6 = arith.constant 1.000000e+00 : f32
    %19 = arith.mulf %cst_6, %17 : f32
    %20 = vector.broadcast %19 : f32 to vector<16x128xf32>
    %21 = arith.cmpf oge, %3, %20 : vector<16x128xf32>
    %22 = arith.extui %21 : vector<16x128xi1> to vector<16x128xi32>
    %23 = arith.sitofp %22 : vector<16x128xi32> to vector<16x128xf32>
    %c0_7 = arith.constant 0 : index
    %c0_8 = arith.constant 0 : index
    %24 = vector.load %arg3[%c0_7, %c0_8] : memref<16x128xf32, #tpu.memory_space<vmem>>, vector<16x128xf32>
    tpu.vector_store %arg3[%c0_7, %c0_8], %23 {strides = array<i32>} : memref<16x128xf32, #tpu.memory_space<vmem>>, vector<16x128xf32>,
    return
  }
  func.func @transform_0(%arg0: i32) -> i32 {
    %c0_i32 = arith.constant 0 : i32
    %c0_i32_0 = arith.constant 0 : i32
    return %c0_i32 : i32
  }
  func.func @transform_1(%arg0: i32) -> (i32, i32) {
    %c0_i32 = arith.constant 0 : i32
    %c0_i32_0 = arith.constant 0 : i32
    %c0_i32_1 = arith.constant 0 : i32
    return %c0_i32, %c0_i32_0 : i32, i32
  }
  func.func @transform_2(%arg0: i32) -> (i32, i32) {
    %c0_i32 = arith.constant 0 : i32
    %c0_i32_0 = arith.constant 0 : i32
    %c0_i32_1 = arith.constant 0 : i32
    return %c0_i32, %c0_i32_0 : i32, i32
  }
  func.func @transform_3(%arg0: i32) -> i32 {
    %c0_i32 = arith.constant 0 : i32
    %c0_i32_0 = arith.constant 0 : i32
    return %c0_i32 : i32
  }
}

</mosaic_0001>

<bundles_post_ra>
// kernel: tpu_custom_call.1
= control target key start
LH: loop header
LB: loop body
LE: loop exit
PB: predicated region body
PF: predicated region fallthrough
CT: control target
= control target key end

     0   :  { %10 = vsyncpa [#allocation4], 0  ;;  %s261_s0 = inlined_call_operand.<no memory space> [shape: f32[1], index: 0, kind: input, shape index: {}]   ;;  %s262_s1 = inlined_call_operand.hbm [shape: f32[16,128], index: 1, kind: input, shape index: {}]   ;;  %s263_s2 = inlined_call_operand.hbm [shape: f32[16,128], index: 2, kind: output, shape index: {0}]   ;;  %s264_s3 = inlined_call_operand.hbm [shape: f32[1], index: 3, kind: output, shape index: {1}]  }
   0x1   :  { %11 = vsyncpa [#allocation5], 0 }
   0x2   :  { %12 = vsyncpa [#allocation6], 0  ;;  %s183_s12 = smov [#allocation3]   ;;  %s123_s16 = scalar_lea.hbm %s262_s1, 256 }
   0x3   :  { %s20_s13 = sshll.u32 %s183_s12, 4  ;;  %p124_p0 = scmp.ne.s32.totalorder %s262_s1, %s123_s16  ;;  %s21_s13 = int_to_ptr.vmem [resolvable:$true] %s20_s13 }
   0x4   :  { %p127_p1 = scmp.lt.u32.totalorder %s123_s16, %s262_s1 }
   0x6   :  { %p129_p2 = pnand %p127_p1, %p124_p0 }
   0x8   :  { %132 = shalt.err (!%p129_p2)
}
   0x9   :  { %s133_s21 = scalar_lea.vmem %s21_s13, 256  ;;  %p138_p4 = scmp.lt.s32.totalorder %s21_s13, %s21_s13 }
   0xa   :  { %p134_p3 = scmp.ne.s32.totalorder %s21_s13, %s133_s21  ;;  %p139_p5 = scmp.lt.s32.totalorder %s133_s21, %s133_s21 }
   0xc   :  { %p140_p6 = por %p139_p5, %p138_p4 }
   0xe   :  { %p141_p7 = pnand %p140_p6, %p134_p3 }
  0x10   :  { %144 = shalt.err (!%p141_p7)
}
  0x11   :  { %s184_s22 = smov 128   ;;  %s185_s23 = smov 8  }
  0x12   :  { %26 = dma.hbm_to_vmem [thread:$0]  %s262_s1, 256, %s21_s13, [#allocation4], %s184_s22, %s184_s22, %s185_s23  }
  0x13   :  { %177 = dma.done.wait [#allocation4], 256  }
  0x14   :  { %178 = vsyncadd [#allocation4], 4294967040  ;;  %v33_v0 = vstv %s261_s0  ;;  %v30_v1 = vld [vmem:[#allocation3] sm:$0xff]  ;;  %v31_v2 = vld [vmem:[#allocation3 + $0x8] sm:$0xff]  ;;  %s186_s29 = smov [#allocation7]   ;;  %s145_s7 = scalar_lea.hbm %s264_s3, 16 }
  0x15   :  { %v34_v3 = vmul.f32 %v33_v0, %v30_v1  ;;  %v35_v4 = vmul.f32 %v33_v0, %v31_v2  ;;  %s82_s30 = sshll.u32 %s186_s29, 4  ;;  %p146_p8 = scmp.ne.s32.totalorder %s264_s3, %s145_s7  ;;  %s227_s30 = int_to_ptr.vmem [resolvable:$true] %s82_s30 }
  0x16   :  { %p149_p9 = scmp.lt.u32.totalorder %s145_s7, %s264_s3 }
  0x17   :  { %v36_v5 = vmax.f32 %v34_v3, 0.0  ;;  %v37_v6 = vmax.f32 %v35_v4, 0.0 }
  0x18   :  { %p151_p10 = pnand %p149_p9, %p146_p8 }
  0x19   :  { %v38_v7 = vmin.f32 %v36_v5, 1.0  ;;  %v39_v8 = vmin.f32 %v37_v6, 1.0 }
  0x1b   :  { %v40_v9 = vmul.f32 %v38_v7, %v38_v7  ;;  %v41_v10 = vmul.f32 %v39_v8, %v39_v8  ;;  %v52_v12 = vadd.f32 %v39_v8, %v38_v7 }
  0x1d   :  { %v42_v11 = vadd.f32 %v41_v10, %v40_v9 }
  0x1f   :  { %43 = vadd.xlane.f32.xlu0 %v42_v11 }
  0x23   :  { %53 = vadd.xlane.f32.xlu0 %v52_v12 }
  0xac   :  { %v44_v13 = vpop.xlane.xlu0 %43 }
  0xad   :  { %v45_v14 = vrot.slane %v44_v13, 4 }
  0xaf   :  { %v46_v15 = vadd.f32 %v45_v14, %v44_v13 }
  0xb0   :  { %v54_v16 = vpop.xlane.xlu0 %53 }
  0xb1   :  { %v47_v17 = vrot.slane %v46_v15, 2  ;;  %v55_v18 = vrot.slane %v54_v16, 4 }
  0xb3   :  { %v56_v19 = vadd.f32 %v55_v18, %v54_v16  ;;  %v48_v20 = vadd.f32 %v47_v17, %v46_v15 }
  0xb5   :  { %v57_v21 = vrot.slane %v56_v19, 2  ;;  %v49_v22 = vrot.slane %v48_v20, 1 }
  0xb7   :  { %v58_v23 = vadd.f32 %v57_v21, %v56_v19  ;;  %v50_v24 = vadd.f32 %v49_v22, %v48_v20 }
  0xb9   :  { %109 = vpush %v50_v24  ;;  %v59_v25 = vrot.slane %v58_v23, 1 }
  0xbb   :  { %v60_v26 = vadd.f32 %v59_v25, %v58_v23 }
  0xbd   :  { %111 = vpush %v60_v26 }
  0xea   :  { %s110_s0 = spop %109 }
  0xee   :  { %s112_s1 = spop %111 }
  0xef   :  { %v62_v27 = vstv %s112_s1 }
  0xf0   :  { %121 = vrcp.f32 %v62_v27 }
  0xfa   :  { %v122_v28 = vpop.eup %121 }
  0xfb   :  { %113 = vpush %v122_v28 }
 0x12c   :  { %s114_s28 = spop %113 }
 0x12d   :  { %s65_s4 = smul.f32 %s114_s28, %s110_s0 }
 0x12f   :  { %v68_v29 = vstv %s65_s4  ;;  %67 = sst [smem:[#allocation8]] %s65_s4 }
 0x130   :  { %vm69_vm0 = vcmp.ge.f32.partialorder %v34_v3, %v68_v29  ;;  %vm70_vm1 = vcmp.ge.f32.partialorder %v35_v4, %v68_v29 }
 0x131   :  { %154 = shalt.err (!%p151_p10)
}
 0x132   :  { %s187_s12 = smov [#allocation8]   ;;  %v188_v30 = vmov 0.0   ;;  %s155_s15 = scalar_lea.vmem %s227_s30, 256 }
 0x133   :  { %96 = dma.smem_to_hbm %s187_s12, 16, %s264_s3, [#allocation6]   ;;  %v107_v31 = vsel %vm69_vm0, 1.0, %v188_v30  ;;  %v108_v32 = vsel %vm70_vm1, 1.0, %v188_v30 }
 0x134   :  { %75 = vst [vmem:[#allocation7] sm:$0xff] %v107_v31  ;;  %76 = vst [vmem:[#allocation7 + $0x8] sm:$0xff] %v108_v32  ;;  %p156_p11 = scmp.ne.s32.totalorder %s227_s30, %s155_s15  ;;  %p160_p12 = scmp.lt.s32.totalorder %s227_s30, %s227_s30 }
 0x135   :  { %p161_p13 = scmp.lt.s32.totalorder %s155_s15, %s155_s15 }
 0x137   :  { %p162_p0 = por %p161_p13, %p160_p12 }
 0x139   :  { %p163_p1 = pnand %p162_p0, %p156_p11 }
 0x13b   :  { %166 = shalt.err (!%p163_p1)
}
 0x13c   :  { %s167_s18 = scalar_lea.hbm %s263_s2, 256 }
 0x13d   :  { %p168_p2 = scmp.ne.s32.totalorder %s263_s2, %s167_s18  ;;  %p171_p3 = scmp.lt.u32.totalorder %s167_s18, %s263_s2 }
 0x13f   :  { %p173_p4 = pnand %p171_p3, %p168_p2 }
 0x141   :  { %176 = shalt.err (!%p173_p4)
}
 0x142   :  { %88 = dma.vmem_to_hbm [thread:$0]  %s227_s30, 256, %s263_s2, [#allocation5], %s184_s22, %s184_s22, %s185_s23  }
 0x143   :  { %179 = dma.done.wait [#allocation5], 256  }
 0x144   :  { %180 = vsyncadd [#allocation5], 4294967040 }
 0x145   :  { %181 = dma.done.wait [#allocation6], 16  }
 0x146   :  { %182 = vsyncadd [#allocation6], 4294967280 }
 0x147   :  { %103 = sfence }
 0x148   :  { %104 = vsyncpa [#allocation4], 1 }
 0x149   :  { %105 = vsyncpa [#allocation5], 1 }
 0x14a   :  { %106 = vsyncpa [#allocation6], 1 }

</bundles_post_ra>
